<compile_context>
chip_gen: v5e
topology: v5e:2x2
jax: 0.10.0
libtpu: 0.0.40
codegen_flags: <defaults>
</compile_context>

<pallas_src>
import jax
import jax.numpy as jnp
from jax import lax
from jax.experimental import pallas as pl
from jax.experimental.pallas import tpu as pltpu


def _make_dsconv_kernel(H, W, C_in, C_out, B_blk):
    HW = H * W

    def kernel(x_ref, wc_ref, o_ref):
        # x_ref  : (B_blk, C_in, H*W)   flattened NCHW input block (f32)
        # wc_ref : (C_out, 9*C_in)      combined depthwise*pointwise weight (bf16)
        # o_ref  : (B_blk, C_out, H*W)  flattened NCHW output block (lane-dense)
        x = x_ref[...]                                           # (B_blk, C_in, HW)

        # ---- boundary predicates, hoisted out of the tap loop (computed once) ----
        p = lax.broadcasted_iota(jnp.int32, (1, HW), 1)          # flat pixel index
        if W & (W - 1) == 0:
            col = p & (W - 1)            # cheap bitwise path (W power of two)
        else:
            col = p % W                  # TODO(synk): slow int modulo for odd W
        row_ok_up = p >= W               # row >= 1      (valid when dy = -1)
        row_ok_down = p < (H - 1) * W    # row <= H - 2  (valid when dy = +1)
        col_ok_left = col >= 1           # col >= 1      (valid when dx = -1)
        col_ok_right = col < (W - 1)     # col <= W - 2  (valid when dx = +1)

        tap_masks = []
        for ky in range(3):
            dy = ky - 1
            for kx in range(3):
                dx = kx - 1
                conds = []
                if dy < 0:
                    conds.append(row_ok_up)
                if dy > 0:
                    conds.append(row_ok_down)
                if dx < 0:
                    conds.append(col_ok_left)
                if dx > 0:
                    conds.append(col_ok_right)
                if not conds:
                    tap_masks.append(None)
                else:
                    m = conds[0]
                    for c in conds[1:]:
                        m = m & c
                    tap_masks.append(m)

        # ---- im2col: 9 lane rolls (XLU) + masked selects, batch fused on lanes ----
        # Tap (ky, kx) at pixel p needs x[c, p + s], s = (ky-1)*W + (kx-1):
        # a lane roll of the flat image by -s, with out-of-bounds lanes zeroed
        # (the mask also kills any wraparound across image / batch boundaries).
        tap_rows = []
        for tap in range(9):
            ky, kx = divmod(tap, 3)
            s = (ky - 1) * W + (kx - 1)
            mask = tap_masks[tap]
            per_b = []
            for b in range(B_blk):
                xb = x[b]                                        # (C_in, HW) f32
                piece = xb if s == 0 else pltpu.roll(xb, (-s) % HW, axis=1)
                if mask is not None:
                    piece = jnp.where(mask, piece, 0.0)
                per_b.append(piece)
            row = per_b[0] if B_blk == 1 else jnp.concatenate(per_b, axis=1)
            tap_rows.append(row.astype(jnp.bfloat16))            # cast at MXU boundary
        xcol = jnp.concatenate(tap_rows, axis=0)                 # (9*C_in, B_blk*HW) bf16

        # Fused depthwise + pointwise: one MXU matmul, K = 9*C_in, lanes = B_blk*HW.
        out = jnp.dot(wc_ref[...], xcol,
                      preferred_element_type=jnp.float32)        # (C_out, B_blk*HW) f32

        # Lane-dense stores, one per batch element (static, 128-aligned lane slices).
        for b in range(B_blk):
            o_ref[b] = out[:, b * HW:(b + 1) * HW].astype(o_ref.dtype)

    return kernel


def _pick_batch_block(N, C_in, C_out, HW, itemsize=4, vmem_budget=8 << 20):
    """Largest divisor of N that keeps >= 2 grid steps (v7x megacore) and a modest
    per-step working set (input + output blocks, double buffered)."""
    best = 1
    for d in range(1, N + 1):
        if N % d:
            continue
        if N >= 2 and (N // d) < 2:
            continue                      # keep both v7x TensorCores busy
        if 2 * d * (C_in + C_out) * HW * itemsize > vmem_budget:
            continue
        best = max(best, d)
    return best


def depthwise_separable_conv(x_nchw, dw_weight, pw_weight):
    """x_nchw: (N, C_in, H, W); dw_weight: (C_in, 1, 3, 3); pw_weight: (C_out, C_in, 1, 1)."""
    N, C_in, H, W = x_nchw.shape
    C_out = pw_weight.shape[0]
    HW = H * W

    # Free layout glue: NCHW is contiguous, so flattening the spatial dims is a
    # metadata-only reshape (no transpose, no pad, no activation HBM round trip).
    x_flat = x_nchw.reshape(N, C_in, HW)

    # Combined weight: Wc[co, tap*C_in + c] = pw[co, c] * dw[c, ky, kx], tap = ky*3+kx.
    dw = dw_weight[:, 0, :, :].reshape(C_in, 9)                  # (C_in, 9), tap-major
    pw = pw_weight[:, :, 0, 0]                                   # (C_out, C_in)
    wc = (pw[:, None, :] * dw.T[None, :, :]).reshape(C_out, 9 * C_in)
    wc = wc.astype(jnp.bfloat16)                                 # bf16 MXU operands

    B_blk = _pick_batch_block(N, C_in, C_out, HW)
    grid = (N // B_blk,)

    kernel = _make_dsconv_kernel(H, W, C_in, C_out, B_blk)

    # NOTE: for production sizes (large H*W or C, esp. v7x's 64 MiB VMEM / v5e's
    # 16 MiB default scoped limit) add a spatial grid axis (row tiles with a 1-row
    # halo) and set pltpu.CompilerParams(vmem_limit_bytes=...); at these demo sizes
    # one block per grid step is only a few KB.
    out_flat = pl.pallas_call(
        kernel,
        out_shape=jax.ShapeDtypeStruct((N, C_out, HW), x_nchw.dtype),
        grid_spec=pltpu.PrefetchScalarGridSpec(
            num_scalar_prefetch=0,
            grid=grid,                          # batch axis; 'parallel' -> v7x megacore
            in_specs=[
                pl.BlockSpec((B_blk, C_in, HW), lambda n: (n, 0, 0)),
                # Grid-invariant weight: constant block index across the only grid
                # axis -> DMA'd once, never re-fetched.
                pl.BlockSpec((C_out, 9 * C_in), lambda n: (0, 0)),
            ],
            out_specs=pl.BlockSpec((B_blk, C_out, HW), lambda n: (n, 0, 0)),
        ),
        compiler_params=pltpu.CompilerParams(
            dimension_semantics=("parallel",)),
        cost_estimate=pl.CostEstimate(
            flops=2 * N * C_out * HW * 9 * C_in,
            transcendentals=0,
            bytes_accessed=x_flat.size * 4 + wc.size * 2 + N * C_out * HW * 4),
    )(x_flat, wc)

    # Free reshape back to NCHW.
    return out_flat.reshape(N, C_out, H, W)


def _reference(x_nchw, dw_weight, pw_weight):
    """Pure-JAX reference using lax.conv_general_dilated (matches PyTorch semantics)."""
    C_in = x_nchw.shape[1]
    dw_out = lax.conv_general_dilated(
        x_nchw, dw_weight, window_strides=(1, 1), padding=((1, 1), (1, 1)),
        dimension_numbers=("NCHW", "OIHW", "NCHW"), feature_group_count=C_in)
    pw_out = lax.conv_general_dilated(
        dw_out, pw_weight, window_strides=(1, 1), padding=((0, 0), (0, 0)),
        dimension_numbers=("NCHW", "OIHW", "NCHW"))
    return pw_out


if __name__ == "__main__":
    key = jax.random.PRNGKey(0)
    k_x, k_dw, k_pw = jax.random.split(key, 3)

    N, C_in, C_out, H, W = 2, 4, 8, 16, 16

    x = jax.random.normal(k_x, (N, C_in, H, W), dtype=jnp.float32)
    # Deterministic synthetic parameters (shapes match nn.Conv2d in __init__).
    dw_weight = jax.random.normal(k_dw, (C_in, 1, 3, 3), dtype=jnp.float32) * 0.1
    pw_weight = jax.random.normal(k_pw, (C_out, C_in, 1, 1), dtype=jnp.float32) * 0.1

    out = jax.block_until_ready(depthwise_separable_conv(x, dw_weight, pw_weight))
    ref = jax.block_until_ready(_reference(x, dw_weight, pw_weight))

    assert out.shape == (N, C_out, H, W), out.shape
    # bf16 MXU operands with f32 accumulation -> slightly looser tolerance than pure f32.
    assert jnp.allclose(out, ref, atol=1e-2, rtol=1e-2), "mismatch vs reference conv"

    print("KERNEL_OK")
</pallas_src>

<mosaic_0001>
module attributes {stable_mosaic.version = 11 : i64} {
  func.func @kernel(%arg0: i32, %arg1: memref<1x4x256xf32, #tpu.memory_space<vmem>>, %arg2: memref<8x36xbf16, #tpu.memory_space<vmem>>, %arg3: memref<1x8x256xf32, #tpu.memory_space<vmem>>) attributes {dimension_semantics = [#tpu.dimension_semantics<parallel>], iteration_bounds = array<i64: 2>, scalar_prefetch = 0 : i64, scratch_operands = 0 : i64, tpu.core_type = #tpu.core_type<tc>, window_params = [{transform_indices = @transform_0, window_bounds = array<i64: 1, 4, 256>}, {pipeline_mode = #tpu.pipeline_mode<synchronous>, transform_indices = @transform_1, window_bounds = array<i64: 8, 36>}, {transform_indices = @transform_2, window_bounds = array<i64: 1, 8, 256>}]} {
    %c0 = arith.constant 0 : index
    %c0_0 = arith.constant 0 : index
    %c0_1 = arith.constant 0 : index
    %0 = vector.load %arg1[%c0, %c0_0, %c0_1] : memref<1x4x256xf32, #tpu.memory_space<vmem>>, vector<1x4x256xf32>
    %1 = tpu.iota {dimensions = array<i32: 1>} : vector<1x256xi32>
    %c15_i32 = arith.constant 15 : i32
    %2 = vector.broadcast %c15_i32 : i32 to vector<1x256xi32>
    %3 = arith.andi %1, %2 : vector<1x256xi32>
    %c16_i32 = arith.constant 16 : i32
    %4 = vector.broadcast %c16_i32 : i32 to vector<1x256xi32>
    %5 = arith.cmpi sge, %1, %4 : vector<1x256xi32>
    %c240_i32 = arith.constant 240 : i32
    %6 = vector.broadcast %c240_i32 : i32 to vector<1x256xi32>
    %7 = arith.cmpi slt, %1, %6 : vector<1x256xi32>
    %c1_i32 = arith.constant 1 : i32
    %8 = vector.broadcast %c1_i32 : i32 to vector<1x256xi32>
    %9 = arith.cmpi sge, %3, %8 : vector<1x256xi32>
    %c15_i32_2 = arith.constant 15 : i32
    %10 = vector.broadcast %c15_i32_2 : i32 to vector<1x256xi32>
    %11 = arith.cmpi slt, %3, %10 : vector<1x256xi32>
    %12 = arith.andi %5, %9 : vector<1x256xi1>
    %13 = arith.andi %5, %11 : vector<1x256xi1>
    %14 = arith.andi %7, %9 : vector<1x256xi1>
    %15 = arith.andi %7, %11 : vector<1x256xi1>
    %16 = vector.shape_cast %0 : vector<1x4x256xf32> to vector<4x256xf32>
    %c17_i32 = arith.constant 17 : i32
    %17 = tpu.dynamic_rotate %16 by %c17_i32 dim 1 : vector<4x256xf32>, i32 -> vector<4x256xf32>
    %cst = arith.constant 0.000000e+00 : f32
    %18 = vector.shape_cast %12 : vector<1x256xi1> to vector<1x256xi1>
    %19 = vector.broadcast %18 : vector<1x256xi1> to vector<4x256xi1>
    %20 = vector.broadcast %cst : f32 to vector<4x256xf32>
    %21 = arith.select %19, %17, %20 : vector<4x256xi1>, vector<4x256xf32>
    %22 = arith.truncf %21 : vector<4x256xf32> to vector<4x256xbf16>
    %23 = vector.shape_cast %0 : vector<1x4x256xf32> to vector<4x256xf32>
    %c16_i32_3 = arith.constant 16 : i32
    %24 = tpu.dynamic_rotate %23 by %c16_i32_3 dim 1 : vector<4x256xf32>, i32 -> vector<4x256xf32>
    %cst_4 = arith.constant 0.000000e+00 : f32
    %25 = vector.shape_cast %5 : vector<1x256xi1> to vector<1x256xi1>
    %26 = vector.broadcast %25 : vector<1x256xi1> to vector<4x256xi1>
    %27 = vector.broadcast %cst_4 : f32 to vector<4x256xf32>
    %28 = arith.select %26, %24, %27 : vector<4x256xi1>, vector<4x256xf32>
    %29 = arith.truncf %28 : vector<4x256xf32> to vector<4x256xbf16>
    %30 = vector.shape_cast %0 : vector<1x4x256xf32> to vector<4x256xf32>
    %c15_i32_5 = arith.constant 15 : i32
    %31 = tpu.dynamic_rotate %30 by %c15_i32_5 dim 1 : vector<4x256xf32>, i32 -> vector<4x256xf32>
    %cst_6 = arith.constant 0.000000e+00 : f32
    %32 = vector.shape_cast %13 : vector<1x256xi1> to vector<1x256xi1>
    %33 = vector.broadcast %32 : vector<1x256xi1> to vector<4x256xi1>
    %34 = vector.broadcast %cst_6 : f32 to vector<4x256xf32>
    %35 = arith.select %33, %31, %34 : vector<4x256xi1>, vector<4x256xf32>
    %36 = arith.truncf %35 : vector<4x256xf32> to vector<4x256xbf16>
    %37 = vector.shape_cast %0 : vector<1x4x256xf32> to vector<4x256xf32>
    %c1_i32_7 = arith.constant 1 : i32
    %38 = tpu.dynamic_rotate %37 by %c1_i32_7 dim 1 : vector<4x256xf32>, i32 -> vector<4x256xf32>
    %cst_8 = arith.constant 0.000000e+00 : f32
    %39 = vector.shape_cast %9 : vector<1x256xi1> to vector<1x256xi1>
    %40 = vector.broadcast %39 : vector<1x256xi1> to vector<4x256xi1>
    %41 = vector.broadcast %cst_8 : f32 to vector<4x256xf32>
    %42 = arith.select %40, %38, %41 : vector<4x256xi1>, vector<4x256xf32>
    %43 = arith.truncf %42 : vector<4x256xf32> to vector<4x256xbf16>
    %44 = vector.shape_cast %0 : vector<1x4x256xf32> to vector<4x256xf32>
    %45 = arith.truncf %44 : vector<4x256xf32> to vector<4x256xbf16>
    %46 = vector.shape_cast %0 : vector<1x4x256xf32> to vector<4x256xf32>
    %c255_i32 = arith.constant 255 : i32
    %47 = tpu.dynamic_rotate %46 by %c255_i32 dim 1 : vector<4x256xf32>, i32 -> vector<4x256xf32>
    %cst_9 = arith.constant 0.000000e+00 : f32
    %48 = vector.shape_cast %11 : vector<1x256xi1> to vector<1x256xi1>
    %49 = vector.broadcast %48 : vector<1x256xi1> to vector<4x256xi1>
    %50 = vector.broadcast %cst_9 : f32 to vector<4x256xf32>
    %51 = arith.select %49, %47, %50 : vector<4x256xi1>, vector<4x256xf32>
    %52 = arith.truncf %51 : vector<4x256xf32> to vector<4x256xbf16>
    %53 = vector.shape_cast %0 : vector<1x4x256xf32> to vector<4x256xf32>
    %c241_i32 = arith.constant 241 : i32
    %54 = tpu.dynamic_rotate %53 by %c241_i32 dim 1 : vector<4x256xf32>, i32 -> vector<4x256xf32>
    %cst_10 = arith.constant 0.000000e+00 : f32
    %55 = vector.shape_cast %14 : vector<1x256xi1> to vector<1x256xi1>
    %56 = vector.broadcast %55 : vector<1x256xi1> to vector<4x256xi1>
    %57 = vector.broadcast %cst_10 : f32 to vector<4x256xf32>
    %58 = arith.select %56, %54, %57 : vector<4x256xi1>, vector<4x256xf32>
    %59 = arith.truncf %58 : vector<4x256xf32> to vector<4x256xbf16>
    %60 = vector.shape_cast %0 : vector<1x4x256xf32> to vector<4x256xf32>
    %c240_i32_11 = arith.constant 240 : i32
    %61 = tpu.dynamic_rotate %60 by %c240_i32_11 dim 1 : vector<4x256xf32>, i32 -> vector<4x256xf32>
    %cst_12 = arith.constant 0.000000e+00 : f32
    %62 = vector.shape_cast %7 : vector<1x256xi1> to vector<1x256xi1>
    %63 = vector.broadcast %62 : vector<1x256xi1> to vector<4x256xi1>
    %64 = vector.broadcast %cst_12 : f32 to vector<4x256xf32>
    %65 = arith.select %63, %61, %64 : vector<4x256xi1>, vector<4x256xf32>
    %66 = arith.truncf %65 : vector<4x256xf32> to vector<4x256xbf16>
    %67 = vector.shape_cast %0 : vector<1x4x256xf32> to vector<4x256xf32>
    %c239_i32 = arith.constant 239 : i32
    %68 = tpu.dynamic_rotate %67 by %c239_i32 dim 1 : vector<4x256xf32>, i32 -> vector<4x256xf32>
    %cst_13 = arith.constant 0.000000e+00 : f32
    %69 = vector.shape_cast %15 : vector<1x256xi1> to vector<1x256xi1>
    %70 = vector.broadcast %69 : vector<1x256xi1> to vector<4x256xi1>
    %71 = vector.broadcast %cst_13 : f32 to vector<4x256xf32>
    %72 = arith.select %70, %68, %71 : vector<4x256xi1>, vector<4x256xf32>
    %73 = arith.truncf %72 : vector<4x256xf32> to vector<4x256xbf16>
    %74 = tpu.concatenate %22, %29, %36, %43, %45, %52, %59, %66, %73 in 0 : vector<4x256xbf16>, vector<4x256xbf16>, vector<4x256xbf16>, vector<4x256xbf16>, vector<4x256xbf16>, vector<4x256xbf16>, vector<4x256xbf16>, vector<4x256xbf16>, vector<4x256xbf16> -> vector<36x256xbf16>
    %c0_14 = arith.constant 0 : index
    %c0_15 = arith.constant 0 : index
    %75 = vector.load %arg2[%c0_14, %c0_15] : memref<8x36xbf16, #tpu.memory_space<vmem>>, vector<8x36xbf16>
    %cst_16 = arith.constant dense<0.000000e+00> : vector<8x256xf32>
    %76 = tpu.matmul %75, %74, %cst_16 {dimension_numbers = #tpu.dot_dimension_numbers<[1], [0], [0], [1], [0, 0, 1, 1], [], []>} : vector<8x36xbf16>, vector<36x256xbf16>, vector<8x256xf32> -> vector<8x256xf32>
    %c0_17 = arith.constant 0 : index
    %c0_18 = arith.constant 0 : index
    %c0_19 = arith.constant 0 : index
    %77 = vector.load %arg3[%c0_17, %c0_18, %c0_19] : memref<1x8x256xf32, #tpu.memory_space<vmem>>, vector<1x8x256xf32>
    %78 = vector.shape_cast %77 : vector<1x8x256xf32> to vector<8x256xf32>
    %79 = vector.shape_cast %76 : vector<8x256xf32> to vector<1x8x256xf32>
    tpu.vector_store %arg3[%c0_17, %c0_18, %c0_19], %79 {strides = array<i32>} : memref<1x8x256xf32, #tpu.memory_space<vmem>>, vector<1x8x256xf32>,
    return
  }
  func.func @transform_0(%arg0: i32) -> (i32, i32, i32) {
    %c0_i32 = arith.constant 0 : i32
    %c0_i32_0 = arith.constant 0 : i32
    %c0_i32_1 = arith.constant 0 : i32
    return %arg0, %c0_i32, %c0_i32_0 : i32, i32, i32
  }
  func.func @transform_1(%arg0: i32) -> (i32, i32) {
    %c0_i32 = arith.constant 0 : i32
    %c0_i32_0 = arith.constant 0 : i32
    %c0_i32_1 = arith.constant 0 : i32
    return %c0_i32, %c0_i32_0 : i32, i32
  }
  func.func @transform_2(%arg0: i32) -> (i32, i32, i32) {
    %c0_i32 = arith.constant 0 : i32
    %c0_i32_0 = arith.constant 0 : i32
    %c0_i32_1 = arith.constant 0 : i32
    return %arg0, %c0_i32, %c0_i32_0 : i32, i32, i32
  }
}

</mosaic_0001>

<bundles_post_ra>
// kernel: tpu_custom_call.1
= control target key start
LH: loop header
LB: loop body
LE: loop exit
PB: predicated region body
PF: predicated region fallthrough
CT: control target
= control target key end

     0   :  { %7 = vsyncpa [#allocation3], 0  ;;  %s1138_s0 = inlined_call_operand.hbm [shape: f32[2,4,256], index: 0, kind: input, shape index: {}]   ;;  %s1139_s1 = inlined_call_operand.hbm [shape: bf16[8,36], index: 1, kind: input, shape index: {}]   ;;  %s1140_s2 = inlined_call_operand.hbm [shape: f32[2,8,256], index: 2, kind: output, shape index: {}]  }
   0x1   :  { %9 = vsyncpa [#allocation3 + $0x1], 0 }
   0x2   :  { %10 = vsyncpa [#allocation6], 0 }
   0x3   :  { %11 = vsyncpa [#allocation4], 0 }
   0x4   :  { %13 = vsyncpa [#allocation4 + $0x1], 0  ;;  %s864_s9 = smov 0   ;;  %s866_s10 = smov 0  }
   0x5   :  { %s868_s11 = smov 0   ;;  %s870_s12 = smov 0  }
   0x6 LB: > { %s885_s13 = sadd.s32 4294967295, %s838_s12   ;;  %s583_s14 = sadd.s32 4294967294, %s838_s12   ;;  %s838_s12 = sphi %s870_s12, %s1166_s12   ;;  %s834_s11 = sphi %s868_s11, %s1165_s11   ;;  %s830_s10 = sphi %s866_s10, %s1164_s10   ;;  %s826_s9 = sphi %s864_s9, %s1163_s9  }
   0x7   : > { %p39_p0 = scmp.ne.s32.totalorder %s830_s10, %s826_s9  ;;  %p40_p1 = scmp.eq.s32.totalorder %s885_s13, 0 }
   0x8   : > { %p84_p2 = scmp.eq.s32.totalorder %s885_s13, 1  ;;  %p90_p3 = scmp.eq.s32.totalorder %s583_s14, 1 }
   0x9   : > { %p894_p4 = por %p40_p1, %p39_p0  ;;  %p584_p5 = scmp.ge.s32.totalorder %s838_s12, 1 }
   0xa   : > { %p899_p6 = por %p90_p3, %p39_p0  ;;  %p97_p7 = scmp.lt.s32.totalorder %s838_s12, 3 }
   0xb   : > { %s109_s19 = sshll.u32 %s1139_s1, 4  ;;  %s840_s21 = smov [#allocation5]   ;;  %s110_s19 = int_to_ptr.hbm [resolvable:$true] %s109_s19 }
   0xc   : > { %p907_p8 = pnand %p584_p5, %p97_p7  ;;  %s111_s22 = sshll.u32 %s840_s21, 4  ;;  %s112_s22 = int_to_ptr.vmem [resolvable:$true] %s111_s22 }
   0xd   : > { %s917_s23 = sadd.s32 1, %s838_s12   ;;  %s26_s24 = sadd.s32 1, %s834_s11 }
   0xe   : > { %p611_p10 = pneg %p907_p8  ;;  %s23_s25 = ssub.s32 %s838_s12, %s917_s23 }
   0xf   : > { %p24_p12 = scmp.eq.s32.totalorder %s23_s25, 0  ;;  %p33_p13 = scmp.ne.s32.totalorder %s834_s11, %s830_s10 }
  0x10   : > { %p612_p11 = pnand %p611_p10, %p40_p1  ;;  %p34_p0 = scmp.eq.s32.totalorder %s838_s12, 0 }
  0x11   : > { %s926_s26 = scalar_select %p24_p12, %s834_s11, %s26_s24  }
  0x12   : > { %614 = dma.hbm_to_vmem [thread:$0]  (!%p612_p11), %s110_s19, 64, %s112_s22, [#allocation6]  }
  0x13   : > { %p930_p3 = por %p84_p2, %p33_p13  ;;  %p624_p5 = scmp.lt.s32.totalorder %s838_s12, 2 }
  0x14   : > { %s122_s28 = sand.u32 1, %s834_s11   ;;  %s601_s29 = sshll.u32 %s838_s12, 3 }
  0x15   : > { %p35_p7 = por %p34_p0, %p33_p13  ;;  %s587_s30 = sshll.u32 %s122_s28, 3 }
  0x16   : > { %s131_s5 = scalar_lea.hbm %s1138_s0, %s601_s29  ;;  %s126_s7 = scalar_lea.vmem [#allocation2], %s587_s30 }
  0x17   : > { %s133_s6 = sshll.u32 %s131_s5, 4  ;;  %s135_s8 = sshll.u32 %s126_s7, 4  ;;  %s134_s6 = int_to_ptr.hbm [resolvable:$true] %s133_s6  ;;  %s136_s8 = int_to_ptr.vmem [resolvable:$true] %s135_s8 }
  0x18   : > { %p940_p10 = pnand %p624_p5, %p35_p7  ;;  %s123_s17 = scalar_lea.sflag [#allocation3], %s122_s28 }
  0x19   : > { %s738_s18 = sshra.s32 %s134_s6, 4  ;;  %s745_s24 = scalar_lea.hbm %s1138_s0, 16  ;;  %s739_s18 = int_to_ptr.hbm [resolvable:$true] %s738_s18 }
  0x1a   : > { %s740_s19 = scalar_lea.hbm %s739_s18, 8  ;;  %p742_p11 = pneg %p940_p10 }
  0x1b   : > { %p741_p2 = scmp.ne.s32.totalorder %s739_s18, %s740_s19  ;;  %p746_p0 = scmp.lt.s32.totalorder %s739_s18, %s1138_s0 }
  0x1c   : > { %p747_p5 = scmp.lt.s32.totalorder %s745_s24, %s740_s19 }
  0x1d   : > { %p743_p12 = pnand %p742_p11, %p741_p2 }
  0x1e   : > { %p748_p7 = por %p747_p5, %p746_p0 }
  0x1f   : > { %p744_p13 = pneg %p743_p12 }
  0x21   : > { %p749_p9 = pnand %p748_p7, %p744_p13 }
  0x23   : > { %752 = shalt.err (!%p749_p9)
}
  0x24   : > { %618 = dma.hbm_to_vmem [thread:$0]  (!%p940_p10), %s134_s6, 128, %s136_s8, %s123_s17  }
  0x25   : > { %144 = sbr.rel (%p907_p8) target bundleno = 393 (0x189), region = 28  ;;  %s957_s28 = sand.u32 (!%p907_p8), 1, %s830_s10  }
  0x26   : > { %s591_s30 = sshll.u32 (!%p907_p8), %s957_s28, 3  ;;  %s147_s3 = scalar_lea.sflag (!%p907_p8), [#allocation3], %s957_s28 }
  0x27   : > { %s150_s4 = scalar_lea.vmem (!%p907_p8), [#allocation2], %s591_s30 }
  0x2a   : > { %813 = dma.done.wait (%p894_p4), %s147_s3, 128  }
  0x2b   : > { %815 = vsyncadd (%p894_p4), %s147_s3, 4294967168 }
  0x2c   : > { %817 = dma.done.wait (%p40_p1), [#allocation6], 64  }
  0x2d   : > { %819 = vsyncadd (%p40_p1), [#allocation6], 4294967232  ;;  %v178_v0 = vld [vmem:[%s150_s4] sm:$0xff]  ;;  %s841_s15 = smov 127   ;;  %s842_s20 = smov 16   ;;  %v179_v27 = vlaneseq  ;;  %vm412_vm15 = vcmask 1041408  }
  0x2e   : > { %201 = vst [vmem:[#allocation1] ss:$2 sm:$0xff] %v178_v0  ;;  %s843_s5 = smov 113   ;;  %s844_s6 = smov 17  }
  0x2f   : > { %s845_s7 = smov 112   ;;  %s846_s8 = smov 111   ;;  %v973_v28 = vand.u32 127, %v179_v27 }
  0x30   : > { %s847_s14 = smov 15   ;;  %s848_s17 = smov 1  }
  0x31   : > { %v976_v29 = vadd.s32 128, %v973_v28  ;;  %v182_v32 = vand.u32 15, %v973_v28  ;;  %vm292_vm0 = vcmp.lt.s32.totalorder %v973_v28, 127  ;;  %vm229_vm1 = vcmp.lt.s32.totalorder %v973_v28, 16  ;;  %s602_s18 = sshll.u32 %s885_s13, 4  ;;  %s593_s19 = sshll.u32 %s957_s28, 4 }
  0x32   : > { %vm184_vm4 = vcmp.ge.s32.totalorder %v973_v28, 16  ;;  %vm311_vm7 = vcmp.lt.s32.totalorder %v973_v28, 113  ;;  %vm330_vm9 = vcmp.lt.s32.totalorder %v973_v28, 112  ;;  %vm210_vm10 = vcmp.lt.s32.totalorder %v973_v28, 17  ;;  %s498_s24 = scalar_lea.hbm %s1140_s2, %s602_s18  ;;  %s176_s25 = scalar_lea.vmem [#allocation7], %s593_s19 }
  0x33   : > { %v183_v33 = vand.u32 15, %v976_v29  ;;  %vm982_vm2 = vcmp.lt.s32.totalorder %v182_v32, 15  ;;  %vm187_vm5 = vcmp.lt.s32.totalorder %v976_v29, 240  ;;  %vm1005_vm8 = vcmp.ge.s32.totalorder %v182_v32, 1  ;;  %s500_s29 = sshll.u32 %s176_s25, 4  ;;  %s502_s30 = sshll.u32 %s498_s24, 4  ;;  %s501_s29 = int_to_ptr.vmem [resolvable:$true] %s500_s29  ;;  %s503_s30 = int_to_ptr.hbm [resolvable:$true] %s502_s30 }
  0x34   : > { %vm1023_vm12 = vmand %vm184_vm4, %vm1005_vm8  ;;  %vm248_vm13 = vcmp.lt.s32.totalorder %v973_v28, 15  ;;  %vm349_vm14 = vcmp.lt.s32.totalorder %v973_v28, 111  ;;  %s487_s3 = scalar_lea.sflag [#allocation4], %s957_s28  ;;  %s782_s4 = sshra.s32 %s503_s30, 4  ;;  %s783_s4 = int_to_ptr.hbm [resolvable:$true] %s782_s4 }
  0x35   : > { %v202_v1 = vld.sshfl [vmem:[#allocation1] sm:$0xff pattern:$0x75316420]  ;;  %v203_v2 = vld.sshfl [vmem:[#allocation1 + $0x8] sm:$0xff pattern:$0x75316420]  ;;  %p789_p9 = scmp.lt.s32.totalorder %s783_s4, %s1140_s2 }
  0x36   : > { %220 = vst [vmem:[#allocation1] ss:$2 sm:$0xff] %v178_v0  ;;  %v693_v18 = vpack.i.bf16 %v203_v2, %v202_v1  ;;  %vm986_vm3 = vcmp.lt.s32.totalorder %v183_v33, 15  ;;  %vm998_vm6 = vcmp.ge.s32.totalorder %v183_v33, 1 }
  0x37   : > { %vm1015_vm11 = vmand %vm187_vm5, %vm998_vm6 }
  0x3d   : > { %v221_v3 = vld.sshfl [vmem:[#allocation1] sm:$0xff pattern:$0x75316420]  ;;  %v222_v4 = vld.sshfl [vmem:[#allocation1 + $0x8] sm:$0xff pattern:$0x75316420] }
  0x3e   : > { %239 = vst [vmem:[#allocation1] ss:$2 sm:$0xff] %v178_v0  ;;  %v668_v14 = vpack.i.bf16 %v222_v4, %v221_v3 }
  0x40   : > { %669 = vrot.lane.b32.xlu2 %v668_v14, %s842_s20 }
  0x45   : > { %v240_v5 = vld.sshfl [vmem:[#allocation1] sm:$0xff pattern:$0x75316420]  ;;  %v241_v6 = vld.sshfl [vmem:[#allocation1 + $0x8] sm:$0xff pattern:$0x75316420] }
  0x46   : > { %258 = vst [vmem:[#allocation1] ss:$2 sm:$0xff] %v178_v0  ;;  %v703_v22 = vpack.i.bf16 %v241_v6, %v240_v5 }
  0x48   : > { %694 = vrot.lane.b32.xlu2 %v693_v18, %s844_s6 }
  0x4d   : > { %v259_v7 = vld.sshfl [vmem:[#allocation1] sm:$0xff pattern:$0x75316420]  ;;  %v260_v8 = vld.sshfl [vmem:[#allocation1 + $0x8] sm:$0xff pattern:$0x75316420] }
  0x4e   : > { %277 = vst [vmem:[#allocation1] ss:$2 sm:$0xff] %v178_v0  ;;  %v698_v26 = vpack.i.bf16 %v260_v8, %v259_v7 }
  0x55   : > { %v969_v9 = vld.sshfl [vmem:[#allocation1] sm:$0xff pattern:$0x75316420]  ;;  %v971_v10 = vld.sshfl [vmem:[#allocation1 + $0x8] sm:$0xff pattern:$0x75316420] }
  0x56   : > { %283 = vst [vmem:[#allocation1] ss:$2 sm:$0xff] %v178_v0  ;;  %v282_v53 = vpack.c.bf16 %v971_v10, %v969_v9 }
  0x58   : > { %v384_v2 = vunpack.c.l.b16 %v282_v53  ;;  %v385_v7 = vunpack.c.h.b16 %v282_v53 }
  0x5d   : > { %v284_v11 = vld.sshfl [vmem:[#allocation1] sm:$0xff pattern:$0x75316420]  ;;  %v285_v12 = vld.sshfl [vmem:[#allocation1 + $0x8] sm:$0xff pattern:$0x75316420] }
  0x5e   : > { %302 = vst [vmem:[#allocation1] ss:$2 sm:$0xff] %v178_v0  ;;  %v673_v13 = vpack.i.bf16 %v285_v12, %v284_v11 }
  0x60   : > { %674 = vrot.lane.b32.xlu0 %v673_v13, %s841_s15  ;;  %s784_s15 = scalar_lea.hbm %s783_s4, 16 }
  0x61   : > { %p785_p1 = scmp.ne.s32.totalorder %s783_s4, %s784_s15 }
  0x63   : > { %p786_p4 = pnand %p785_p1, %p930_p3 }
  0x65   : > { %v303_v15 = vld.sshfl [vmem:[#allocation1] sm:$0xff pattern:$0x75316420]  ;;  %v304_v16 = vld.sshfl [vmem:[#allocation1 + $0x8] sm:$0xff pattern:$0x75316420]  ;;  %p787_p8 = pneg %p786_p4 }
  0x66   : > { %v678_v17 = vpack.i.bf16 %v304_v16, %v303_v15  ;;  %321 = vst [vmem:[#allocation1] ss:$2 sm:$0xff] %v178_v0 }
  0x68   : > { %679 = vrot.lane.b32.xlu1 %v678_v17, %s843_s5  ;;  %s788_s5 = scalar_lea.hbm %s1140_s2, 32 }
  0x69   : > { %p790_p10 = scmp.lt.s32.totalorder %s788_s5, %s784_s15 }
  0x6b   : > { %p791_p2 = por %p790_p10, %p789_p9 }
  0x6d   : > { %v322_v19 = vld.sshfl [vmem:[#allocation1] sm:$0xff pattern:$0x75316420]  ;;  %v323_v20 = vld.sshfl [vmem:[#allocation1 + $0x8] sm:$0xff pattern:$0x75316420]  ;;  %p792_p11 = pnand %p791_p2, %p787_p8 }
  0x6e   : > { %v683_v21 = vpack.i.bf16 %v323_v20, %v322_v19  ;;  %340 = vst [vmem:[#allocation1] ss:$2 sm:$0xff] %v178_v0 }
  0x70   : > { %684 = vrot.lane.b32.xlu1 %v683_v21, %s845_s7  ;;  %v386_v21 = vpack.c.b16 %v384_v2, %v384_v2 }
  0x75   : > { %v341_v23 = vld.sshfl [vmem:[#allocation1] sm:$0xff pattern:$0x75316420]  ;;  %v342_v24 = vld.sshfl [vmem:[#allocation1 + $0x8] sm:$0xff pattern:$0x75316420] }
  0x76   : > { %v688_v25 = vpack.i.bf16 %v342_v24, %v341_v23 }
  0x78   : > { %689 = vrot.lane.b32.xlu0 %v688_v25, %s846_s8  ;;  %704 = vrot.lane.b32.xlu1 %v703_v22, %s847_s14  ;;  %v387_v22 = vpack.c.b16 %v385_v7, %v385_v7 }
  0x80   : > { %699 = vrot.lane.b32.xlu0 %v698_v26, %s848_s17 }
  0x9a   : > { %v670_v31 = vpop.permute.xlu2 %669 }
  0x9b   : > { %v672_v36 = vunpack.i.h.bf16 %v670_v31  ;;  %v671_v37 = vunpack.i.l.bf16 %v670_v31 }
  0x9d   : > { %v231_v43 = vsel %vm229_vm1, %v672_v36, %v671_v37  ;;  %v230_v46 = vsel %vm229_vm1, %v671_v37, %v672_v36  ;;  %vm1059_vm1 = vmand %vm184_vm4, %vm982_vm2 }
  0x9e   : > { %v236_v47 = vsel %vm184_vm4, %v231_v43, 0.0  ;;  %vm267_vm4 = vcmp.lt.s32.totalorder %v973_v28, 1 }
  0x9f   : > { %v238_v54 = vpack.c.bf16 %v230_v46, %v236_v47 }
  0xa1   : > { %v365_v3 = vunpack.c.l.b16 %v238_v54  ;;  %v366_v13 = vunpack.c.h.b16 %v238_v54 }
  0xa2   : > { %v695_v48 = vpop.permute.xlu2 %694 }
  0xa3   : > { %v697_v55 = vunpack.i.h.bf16 %v695_v48  ;;  %v696_v56 = vunpack.i.l.bf16 %v695_v48  ;;  %v1043_v20 = vpack.c.b16 %v365_v3, %v365_v3  ;;  %v1045_v23 = vpack.c.b16 %v366_v13, %v366_v13 }
  0xa5   : > { %v211_v5 = vsel %vm210_vm10, %v696_v56, %v697_v55  ;;  %v212_v6 = vsel %vm210_vm10, %v697_v55, %v696_v56  ;;  %v370_v28 = vrot.slane %v1045_v23, 6 }
  0xa6   : > { %v217_v16 = vsel %vm1023_vm12, %v212_v6, 0.0  ;;  %v218_v17 = vsel %vm998_vm6, %v211_v5, 0.0 }
  0xa7   : > { %v219_v25 = vpack.c.bf16 %v218_v17, %v217_v16  ;;  %v369_v17 = vrot.slane %v1043_v20, 6 }
  0xa9   : > { %v360_v46 = vunpack.c.l.b16 %v219_v25 }
  0xd2   : > { %v675_v30 = vpop.permute.xlu0 %674 }
  0xd3   : > { %v677_v34 = vunpack.i.h.bf16 %v675_v30  ;;  %v676_v35 = vunpack.i.l.bf16 %v675_v30 }
  0xd5   : > { %v293_v40 = vsel %vm292_vm0, %v676_v35, %v677_v34  ;;  %v294_v41 = vsel %vm292_vm0, %v677_v34, %v676_v35  ;;  %vm1051_vm0 = vmand %vm187_vm5, %vm986_vm3  ;;  %v447_v35 = vld [vmem:[#allocation5] sm:$0xf] }
  0xd6   : > { %v299_v44 = vsel %vm982_vm2, %v293_v40, 0.0  ;;  %v300_v45 = vsel %vm986_vm3, %v294_v41, 0.0 }
  0xd7   : > { %v301_v51 = vpack.c.bf16 %v300_v45, %v299_v44 }
  0xd9   : > { %v389_v61 = vunpack.c.l.b16 %v301_v51  ;;  %v390_v62 = vunpack.c.h.b16 %v301_v51 }
  0xda   : > { %v680_v42 = vpop.permute.xlu1 %679 }
  0xdb   : > { %v682_v49 = vunpack.i.h.bf16 %v680_v42  ;;  %v681_v50 = vunpack.i.l.bf16 %v680_v42  ;;  %v391_v14 = vpack.c.b16 %v389_v61, %v389_v61  ;;  %v392_v15 = vpack.c.b16 %v390_v62, %v390_v62 }
  0xdc   : > { %v361_v61 = vunpack.c.h.b16 %v219_v25 }
  0xdd   : > { %v312_v59 = vsel %vm311_vm7, %v681_v50, %v682_v49  ;;  %v313_v60 = vsel %vm311_vm7, %v682_v49, %v681_v50  ;;  %v393_v27 = vrot.slane %v391_v14, 6  ;;  %v394_v30 = vrot.slane %v392_v15, 6 }
  0xde   : > { %v318_v8 = vsel %vm1005_vm8, %v312_v59, 0.0  ;;  %v319_v9 = vsel %vm1015_vm11, %v313_v60, 0.0 }
  0xdf   : > { %v320_v18 = vpack.c.bf16 %v319_v9, %v318_v8  ;;  %v433_v38 = vsel %vm412_vm15, %v386_v21, %v393_v27  ;;  %v436_v60 = vsel %vm412_vm15, %v387_v22, %v394_v30 }
  0xe1   : > { %v396_v37 = vunpack.c.l.b16 %v320_v18  ;;  %v397_v41 = vunpack.c.h.b16 %v320_v18  ;;  %v363_v18 = vpack.c.b16 %v361_v61, %v361_v61 }
  0xe2   : > { %v685_v63 = vpop.permute.xlu1 %684 }
  0xe3   : > { %v687_v0 = vunpack.i.h.bf16 %v685_v63  ;;  %v686_v1 = vunpack.i.l.bf16 %v685_v63  ;;  %v398_v53 = vpack.c.b16 %v396_v37, %v396_v37  ;;  %v399_v55 = vpack.c.b16 %v397_v41, %v397_v41 }
  0xe4   : > { %v418_v20 = vsel %vm412_vm15, %v363_v18, %v370_v28 }
  0xe5   : > { %v331_v10 = vsel %vm330_vm9, %v686_v1, %v687_v0  ;;  %v332_v11 = vsel %vm330_vm9, %v687_v0, %v686_v1  ;;  %v362_v0 = vpack.c.b16 %v360_v46, %v360_v46 }
  0xe6   : > { %v338_v12 = vsel %vm187_vm5, %v332_v11, 0.0  ;;  %vm419_vm5 = vcmask 1043456  }
  0xe7   : > { %v339_v19 = vpack.c.bf16 %v338_v12, %v331_v10  ;;  %v438_v5 = vsel %vm419_vm5, %v433_v38, %v398_v53  ;;  %v440_v7 = vsel %vm419_vm5, %v436_v60, %v399_v55 }
  0xe9   : > { %v401_v40 = vunpack.c.l.b16 %v339_v19  ;;  %v402_v42 = vunpack.c.h.b16 %v339_v19 }
  0xea   : > { %v690_v24 = vpop.permute.xlu0 %689  ;;  %v705_v26 = vpop.permute.xlu1 %704 }
  0xeb   : > { %v692_v31 = vunpack.i.h.bf16 %v690_v24  ;;  %v691_v32 = vunpack.i.l.bf16 %v690_v24  ;;  %v707_v33 = vunpack.i.h.bf16 %v705_v26  ;;  %v706_v34 = vunpack.i.l.bf16 %v705_v26 }
  0xec   : > { %v403_v54 = vpack.c.b16 %v401_v40, %v401_v40  ;;  %v404_v56 = vpack.c.b16 %v402_v42, %v402_v42  ;;  %v415_v26 = vsel %vm412_vm15, %v362_v0, %v369_v17 }
  0xed   : > { %v249_v43 = vsel %vm248_vm13, %v706_v34, %v707_v33  ;;  %v250_v29 = vsel %vm248_vm13, %v707_v33, %v706_v34  ;;  %v350_v44 = vsel %vm349_vm14, %v691_v32, %v692_v31  ;;  %v351_v45 = vsel %vm349_vm14, %v692_v31, %v691_v32 }
  0xee   : > { %v356_v47 = vsel %vm982_vm2, %v350_v44, 0.0  ;;  %v357_v48 = vsel %vm1051_vm0, %v351_v45, 0.0  ;;  %v255_v49 = vsel %vm1059_vm1, %v250_v29, 0.0  ;;  %v256_v50 = vsel %vm986_vm3, %v249_v43, 0.0 }
  0xef   : > { %v358_v51 = vpack.c.bf16 %v357_v48, %v356_v47  ;;  %v257_v62 = vpack.c.bf16 %v256_v50, %v255_v49  ;;  %vm424_vm2 = vcmask 1045504   ;;  %v405_v4 = vrot.slane %v403_v54, 2 }
  0xf0   : > { %v406_v6 = vrot.slane %v404_v56, 2  ;;  %vm448_vm3 = vcmask 293888  }
  0xf1   : > { %v408_v58 = vunpack.c.l.b16 %v358_v51  ;;  %v409_v59 = vunpack.c.h.b16 %v358_v51  ;;  %v372_v14 = vunpack.c.l.b16 %v257_v62  ;;  %v373_v15 = vunpack.c.h.b16 %v257_v62 }
  0xf2   : > { %v700_v63 = vpop.permute.xlu0 %699  ;;  %v442_v19 = vsel %vm424_vm2, %v438_v5, %v405_v4  ;;  %v445_v21 = vsel %vm424_vm2, %v440_v7, %v406_v6 }
  0xf3   : > { %v702_v1 = vunpack.i.h.bf16 %v700_v63  ;;  %v701_v39 = vunpack.i.l.bf16 %v700_v63  ;;  %v410_v2 = vpack.c.b16 %v408_v58, %v408_v58  ;;  %v411_v3 = vpack.c.b16 %v409_v59, %v409_v59 }
  0xf4   : > { %v374_v52 = vpack.c.b16 %v372_v14, %v372_v14  ;;  %v375_v24 = vpack.c.b16 %v373_v15, %v373_v15 }
  0xf5   : > { %v268_v8 = vsel %vm267_vm4, %v701_v39, %v702_v1  ;;  %v269_v9 = vsel %vm267_vm4, %v702_v1, %v701_v39  ;;  %v453_v10 = vsel %vm412_vm15, %v410_v2, 0  ;;  %v456_v11 = vsel %vm412_vm15, %v411_v3, 0 }
  0xf6   : > { %v274_v12 = vsel %vm1005_vm8, %v269_v9, 0.0  ;;  %v275_v13 = vsel %vm998_vm6, %v268_v8, 0.0  ;;  %463 = vmatpush.bf16.msra.mxu0 %v453_v10  ;;  %476 = vmatpush.bf16.msra.mxu1 %v456_v11  ;;  %v421_v31 = vsel %vm419_vm5, %v415_v26, %v374_v52  ;;  %v423_v32 = vsel %vm419_vm5, %v418_v20, %v375_v24 }
  0xf7   : > { %v276_v16 = vpack.c.bf16 %v275_v13, %v274_v12 }
  0xf9   : > { %v377_v22 = vunpack.c.l.b16 %v276_v16  ;;  %v378_v57 = vunpack.c.h.b16 %v276_v16 }
  0xfa   : > { %464 = vmatpush.bf16.msra.mxu0 %v442_v19  ;;  %477 = vmatpush.bf16.msra.mxu1 %v445_v21 }
  0xfb   : > { %v379_v25 = vpack.c.b16 %v377_v22, %v377_v22  ;;  %v380_v27 = vpack.c.b16 %v378_v57, %v378_v57 }
  0xfd   : > { %v381_v30 = vrot.slane %v379_v25, 2  ;;  %v382_v23 = vrot.slane %v380_v27, 2 }
  0xff   : > { %v426_v33 = vsel %vm424_vm2, %v421_v31, %v381_v30  ;;  %v429_v34 = vsel %vm424_vm2, %v423_v32, %v382_v23 }
 0x100   : > { %465 = vmatpush.bf16.msra.mxu0 %v426_v33  ;;  %478 = vmatpush.bf16.msra.mxu1 %v429_v34 }
 0x103   : > { %594 = vmatmul.msk.bf16.vlgmr.msra.gmra.mxu0 %vm448_vm3, %v447_v35  ;;  %595 = vmatmul.msk.bf16.vlgmr.msra.gmra.mxu1 %vm448_vm3, %v447_v35 }
 0x180   : > { %v467_v36 = vpop.f32.mrf.mxu0  ;;  %v480_v37 = vpop.f32.mrf.mxu1 }
 0x181   : > { %484 = vst [vmem:[%s176_s25] sm:$0xff] %v467_v36 }
 0x182   : > { %485 = vst [vmem:[%s176_s25 + $0x8] sm:$0xff] %v480_v37 }
 0x183   : > { %795 = shalt.err (!%p792_p11)
}
 0x184   : > { %609 = dma.vmem_to_hbm [thread:$0]  (%p930_p3), %s501_s29, 256, %s503_s30, %s487_s3  }
 0x188   : > { %v469_v40 = vpop.f32.mrf.mxu0  ;;  %v482_v41 = vpop.f32.mrf.mxu1 }
 0x189 PF: > { %s514_s28 = sand.u32 1, %s826_s9   ;;  %p1162_p12 = scmp.ge.s32.totalorder %s838_s12, 2 }
 0x18a   : > { %s515_s8 = scalar_lea.sflag [#allocation4], %s514_s28 }
 0x18b   : > { %p620_p13 = pnand %p1162_p12, %p899_p6 }
 0x18d   : > { %p621_p0 = pneg %p620_p13 }
 0x18f   : > { %821 = dma.done.wait (%p621_p0), %s515_s8, 256  }
 0x190   : > { %823 = vsyncadd (%p621_p0), %s515_s8, 4294967040  ;;  %p16_p3 = scmp.ge.s32.totalorder %s917_s23, 4   ;;  %s1163_s9 = smov %s830_s10 }
 0x191   : > { %s1164_s10 = smov %s834_s11  ;;  %s1165_s11 = smov %s926_s26 }
 0x192   : > { %s1166_s12 = smov %s917_s23  ;;  %18 = sbr.rel (!%p16_p3) target bundleno = 6 (0x6), region = 77 }
 0x197   :  { %521 = vsyncpa [#allocation3], 1 }
 0x198   :  { %523 = vsyncpa [#allocation3 + $0x1], 1 }
 0x199   :  { %524 = vsyncpa [#allocation6], 1 }
 0x19a   :  { %525 = vsyncpa [#allocation4], 1 }
 0x19b   :  { %527 = vsyncpa [#allocation4 + $0x1], 1 }

</bundles_post_ra>
